<compile_context>
chip_gen: v6e
topology: v6e:2x2x1
jax: 0.10.0
libtpu: 0.0.40
codegen_flags: <defaults>
</compile_context>

<pallas_src>
import functools

import numpy as np
import jax
import jax.numpy as jnp
from jax.experimental import pallas as pl
from jax.experimental.pallas import tpu as pltpu


def _round_up(x, m):
    return ((x + m - 1) // m) * m


def _focal_kernel(x_ref, lbl_ref, psum_ref, *, n_classes, gamma, alpha, chunk):
    """One grid step = (batch b, spatial tile t).

    x_ref     : VMEM (1, C, TR, 128)   logits tile (native dtype)
    lbl_ref   : VMEM (1, TR, 128)      int32 labels (-1 = spatial padding)
    psum_ref  : VMEM (1, 1, 8, 128)    per-step partial loss sums (f32)
    alpha     : None or tuple of Python floats (compile-time constants)
    """
    tr = x_ref.shape[2]
    acc = jnp.zeros((8, 128), jnp.float32)

    for r0 in range(0, tr, chunk):                      # static, <= 16 iters
        rows = pl.ds(r0, chunk)
        lbl = lbl_ref[0, rows, :]                       # (chunk, 128) int32

        # stable log-softmax: running max over classes
        m = x_ref[0, 0, rows, :].astype(jnp.float32)
        for c in range(1, n_classes):
            m = jnp.maximum(m, x_ref[0, c, rows, :].astype(jnp.float32))

        sumexp = jnp.zeros((chunk, 128), jnp.float32)
        gathered = jnp.zeros((chunk, 128), jnp.float32)
        at = jnp.zeros((chunk, 128), jnp.float32) if alpha is not None else None
        for c in range(n_classes):
            x_c = x_ref[0, c, rows, :].astype(jnp.float32)
            mask_c = lbl == c                           # single compare, reused
            sumexp = sumexp + jnp.exp(x_c - m)
            gathered = jnp.where(mask_c, x_c, gathered)
            if alpha is not None:
                at = jnp.where(mask_c, alpha[c], at)

        logpt = gathered - m - jnp.log(sumexp)          # log p_t
        pt = jnp.exp(logpt)                             # p_t (pre-alpha, as in torch)
        if alpha is not None:
            logpt = logpt * at

        # (1 - pt) ** gamma : unroll small integer gamma, else fall back to pow
        one_m_pt = 1.0 - pt
        g = float(gamma)
        if g == int(g) and 0 <= int(g) <= 8:
            focal = jnp.ones_like(one_m_pt)
            for _ in range(int(g)):
                focal = focal * one_m_pt
        else:
            focal = one_m_pt ** g

        elem = -(focal * logpt)
        elem = jnp.where(lbl >= 0, elem, 0.0)           # zero out spatial padding

        # reduce the chunk to one (8,128) vreg via aligned static sublane slices
        part = jnp.zeros((8, 128), jnp.float32)
        for s0 in range(0, chunk, 8):
            part = part + elem[s0:s0 + 8, :]
        acc = acc + part

    psum_ref[0, 0] = acc


def focal_loss_pallas(logits, target, gamma=2, alpha=None, size_average=True,
                      max_tile_rows=512, vmem_budget_bytes=12 * 1024 * 1024):
    """Pallas equivalent of FocalLoss(gamma, alpha, size_average)(logits, target)."""
    B, C, H, W = logits.shape
    S = H * W
    N = B * S
    chunk = 32

    x = jnp.reshape(logits, (B, C, S))                  # free reshape, no transpose
    lbl = jnp.reshape(target, (B, S)).astype(jnp.int32)

    # ---- tile selection: biggest tile that keeps double-buffers in budget ----
    rows = (S + 127) // 128
    itemsize = jnp.dtype(x.dtype).itemsize
    per_row_bytes = 128 * (C * itemsize + 4)            # logits row (all classes) + labels
    tr_cap = max(chunk, (vmem_budget_bytes // (2 * per_row_bytes)) // chunk * chunk)
    tr = min(max_tile_rows, tr_cap, _round_up(rows, chunk))
    rows_pad = _round_up(rows, tr)
    s_pad = rows_pad * 128
    if s_pad != S:
        x = jnp.pad(x, ((0, 0), (0, 0), (0, s_pad - S)))
        lbl = jnp.pad(lbl, ((0, 0), (0, s_pad - S)), constant_values=-1)
    x = x.reshape(B, C, rows_pad, 128)
    lbl = lbl.reshape(B, rows_pad, 128)
    num_tiles = rows_pad // tr

    # ---- per-class alpha table baked as compile-time constants ----
    if alpha is None:
        alpha_tuple = None
    else:
        if isinstance(alpha, (float, int)):
            alpha_list = [float(alpha), 1.0 - float(alpha)]
        elif isinstance(alpha, (list, tuple)):
            alpha_list = [float(a) for a in alpha]
        else:
            alpha_list = [float(a) for a in np.asarray(jax.device_get(alpha)).reshape(-1)]
        if len(alpha_list) < C:
            raise ValueError("alpha table shorter than number of classes")
        alpha_tuple = tuple(alpha_list[:C])

    kernel = functools.partial(_focal_kernel, n_classes=C, gamma=gamma,
                               alpha=alpha_tuple, chunk=chunk)

    partials = pl.pallas_call(
        kernel,
        out_shape=jax.ShapeDtypeStruct((B, num_tiles, 8, 128), jnp.float32),
        grid_spec=pltpu.PrefetchScalarGridSpec(
            num_scalar_prefetch=0,
            grid=(B, num_tiles),
            in_specs=[
                pl.BlockSpec((1, C, tr, 128), lambda b, t: (b, 0, t, 0)),
                pl.BlockSpec((1, tr, 128), lambda b, t: (b, t, 0)),
            ],
            out_specs=pl.BlockSpec((1, 1, 8, 128), lambda b, t: (b, t, 0, 0)),
        ),
        compiler_params=pltpu.CompilerParams(
            dimension_semantics=("parallel", "parallel")),
    )(x, lbl)

    total = jnp.sum(partials)                           # tiny final reduction
    return total / N if size_average else total


def focal_loss_ref(logits, target, gamma=2, alpha=None, size_average=True):
    """Pure-JAX reference replicating the PyTorch FocalLoss semantics."""
    B, C = logits.shape[0], logits.shape[1]
    x = jnp.reshape(logits, (B, C, -1))
    x = jnp.transpose(x, (0, 2, 1)).reshape(-1, C).astype(jnp.float32)
    t = jnp.reshape(target, (-1,)).astype(jnp.int32)
    logp = jax.nn.log_softmax(x, axis=1)
    logpt = jnp.take_along_axis(logp, t[:, None], axis=1)[:, 0]
    pt = jnp.exp(logpt)
    if alpha is not None:
        if isinstance(alpha, (float, int)):
            a = jnp.asarray([alpha, 1.0 - alpha], jnp.float32)
        else:
            a = jnp.asarray(alpha, jnp.float32).reshape(-1)
        logpt = logpt * a[t]
    loss = -((1.0 - pt) ** float(gamma)) * logpt
    return jnp.mean(loss) if size_average else jnp.sum(loss)


if __name__ == "__main__":
    key = jax.random.PRNGKey(0)
    k1, k2 = jax.random.split(key)

    B, C, H, W = 2, 4, 16, 16
    logits = jax.random.normal(k1, (B, C, H, W), dtype=jnp.float32)
    target = jax.random.randint(k2, (B, 1, H, W), 0, C, dtype=jnp.int32)

    # default FocalLoss(gamma=2, alpha=None, size_average=True)
    loss = focal_loss_pallas(logits, target, gamma=2, alpha=None, size_average=True)
    loss = jax.block_until_ready(loss)
    ref = focal_loss_ref(logits, target, gamma=2, alpha=None, size_average=True)
    assert abs(float(loss) - float(ref)) < 1e-5 * max(1.0, abs(float(ref))), \
        (float(loss), float(ref))

    # alpha-weighted, sum-reduced variant
    alpha = [0.1, 0.2, 0.3, 0.4]
    loss2 = focal_loss_pallas(logits, target, gamma=2, alpha=alpha, size_average=False)
    loss2 = jax.block_until_ready(loss2)
    ref2 = focal_loss_ref(logits, target, gamma=2, alpha=alpha, size_average=False)
    assert abs(float(loss2) - float(ref2)) < 1e-4 * max(1.0, abs(float(ref2))), \
        (float(loss2), float(ref2))

    print("KERNEL_OK")
</pallas_src>

<mosaic_0001>
module attributes {stable_mosaic.version = 11 : i64} {
  func.func @_focal_kernel(%arg0: i32, %arg1: i32, %arg2: memref<1x4x32x128xf32, #tpu.memory_space<vmem>>, %arg3: memref<1x32x128xi32, #tpu.memory_space<vmem>>, %arg4: memref<1x1x8x128xf32, #tpu.memory_space<vmem>>) attributes {dimension_semantics = [#tpu.dimension_semantics<parallel>, #tpu.dimension_semantics<parallel>], iteration_bounds = array<i64: 2, 1>, scalar_prefetch = 0 : i64, scratch_operands = 0 : i64, tpu.core_type = #tpu.core_type<tc>, window_params = [{transform_indices = @transform_0, window_bounds = array<i64: 1, 4, 32, 128>}, {transform_indices = @transform_1, window_bounds = array<i64: 1, 32, 128>}, {transform_indices = @transform_2, window_bounds = array<i64: 1, 1, 8, 128>}]} {
    %cst = arith.constant 0.000000e+00 : f32
    %0 = vector.broadcast %cst : f32 to vector<8x128xf32>
    %c0 = arith.constant 0 : index
    %c0_0 = arith.constant 0 : index
    %c0_1 = arith.constant 0 : index
    %1 = vector.load %arg3[%c0, %c0_0, %c0_1] : memref<1x32x128xi32, #tpu.memory_space<vmem>>, vector<1x32x128xi32>
    %2 = vector.shape_cast %1 : vector<1x32x128xi32> to vector<32x128xi32>
    %c0_2 = arith.constant 0 : index
    %c0_3 = arith.constant 0 : index
    %c0_4 = arith.constant 0 : index
    %c0_5 = arith.constant 0 : index
    %3 = vector.load %arg2[%c0_2, %c0_3, %c0_4, %c0_5] : memref<1x4x32x128xf32, #tpu.memory_space<vmem>>, vector<1x1x32x128xf32>
    %4 = vector.shape_cast %3 : vector<1x1x32x128xf32> to vector<32x128xf32>
    %c0_6 = arith.constant 0 : index
    %c1 = arith.constant 1 : index
    %c0_7 = arith.constant 0 : index
    %c0_8 = arith.constant 0 : index
    %5 = vector.load %arg2[%c0_6, %c1, %c0_7, %c0_8] : memref<1x4x32x128xf32, #tpu.memory_space<vmem>>, vector<1x1x32x128xf32>
    %6 = vector.shape_cast %5 : vector<1x1x32x128xf32> to vector<32x128xf32>
    %7 = arith.maximumf %4, %6 : vector<32x128xf32>
    %c0_9 = arith.constant 0 : index
    %c2 = arith.constant 2 : index
    %c0_10 = arith.constant 0 : index
    %c0_11 = arith.constant 0 : index
    %8 = vector.load %arg2[%c0_9, %c2, %c0_10, %c0_11] : memref<1x4x32x128xf32, #tpu.memory_space<vmem>>, vector<1x1x32x128xf32>
    %9 = vector.shape_cast %8 : vector<1x1x32x128xf32> to vector<32x128xf32>
    %10 = arith.maximumf %7, %9 : vector<32x128xf32>
    %c0_12 = arith.constant 0 : index
    %c3 = arith.constant 3 : index
    %c0_13 = arith.constant 0 : index
    %c0_14 = arith.constant 0 : index
    %11 = vector.load %arg2[%c0_12, %c3, %c0_13, %c0_14] : memref<1x4x32x128xf32, #tpu.memory_space<vmem>>, vector<1x1x32x128xf32>
    %12 = vector.shape_cast %11 : vector<1x1x32x128xf32> to vector<32x128xf32>
    %13 = arith.maximumf %10, %12 : vector<32x128xf32>
    %cst_15 = arith.constant 0.000000e+00 : f32
    %14 = vector.broadcast %cst_15 : f32 to vector<32x128xf32>
    %cst_16 = arith.constant 0.000000e+00 : f32
    %15 = vector.broadcast %cst_16 : f32 to vector<32x128xf32>
    %c0_17 = arith.constant 0 : index
    %c0_18 = arith.constant 0 : index
    %c0_19 = arith.constant 0 : index
    %c0_20 = arith.constant 0 : index
    %16 = vector.load %arg2[%c0_17, %c0_18, %c0_19, %c0_20] : memref<1x4x32x128xf32, #tpu.memory_space<vmem>>, vector<1x1x32x128xf32>
    %17 = vector.shape_cast %16 : vector<1x1x32x128xf32> to vector<32x128xf32>
    %c0_i32 = arith.constant 0 : i32
    %18 = vector.broadcast %c0_i32 : i32 to vector<32x128xi32>
    %19 = arith.cmpi eq, %2, %18 : vector<32x128xi32>
    %20 = arith.subf %17, %13 : vector<32x128xf32>
    %21 = math.exp %20 : vector<32x128xf32>
    %22 = arith.addf %14, %21 : vector<32x128xf32>
    %23 = arith.select %19, %17, %15 : vector<32x128xi1>, vector<32x128xf32>
    %c0_21 = arith.constant 0 : index
    %c1_22 = arith.constant 1 : index
    %c0_23 = arith.constant 0 : index
    %c0_24 = arith.constant 0 : index
    %24 = vector.load %arg2[%c0_21, %c1_22, %c0_23, %c0_24] : memref<1x4x32x128xf32, #tpu.memory_space<vmem>>, vector<1x1x32x128xf32>
    %25 = vector.shape_cast %24 : vector<1x1x32x128xf32> to vector<32x128xf32>
    %c1_i32 = arith.constant 1 : i32
    %26 = vector.broadcast %c1_i32 : i32 to vector<32x128xi32>
    %27 = arith.cmpi eq, %2, %26 : vector<32x128xi32>
    %28 = arith.subf %25, %13 : vector<32x128xf32>
    %29 = math.exp %28 : vector<32x128xf32>
    %30 = arith.addf %22, %29 : vector<32x128xf32>
    %31 = arith.select %27, %25, %23 : vector<32x128xi1>, vector<32x128xf32>
    %c0_25 = arith.constant 0 : index
    %c2_26 = arith.constant 2 : index
    %c0_27 = arith.constant 0 : index
    %c0_28 = arith.constant 0 : index
    %32 = vector.load %arg2[%c0_25, %c2_26, %c0_27, %c0_28] : memref<1x4x32x128xf32, #tpu.memory_space<vmem>>, vector<1x1x32x128xf32>
    %33 = vector.shape_cast %32 : vector<1x1x32x128xf32> to vector<32x128xf32>
    %c2_i32 = arith.constant 2 : i32
    %34 = vector.broadcast %c2_i32 : i32 to vector<32x128xi32>
    %35 = arith.cmpi eq, %2, %34 : vector<32x128xi32>
    %36 = arith.subf %33, %13 : vector<32x128xf32>
    %37 = math.exp %36 : vector<32x128xf32>
    %38 = arith.addf %30, %37 : vector<32x128xf32>
    %39 = arith.select %35, %33, %31 : vector<32x128xi1>, vector<32x128xf32>
    %c0_29 = arith.constant 0 : index
    %c3_30 = arith.constant 3 : index
    %c0_31 = arith.constant 0 : index
    %c0_32 = arith.constant 0 : index
    %40 = vector.load %arg2[%c0_29, %c3_30, %c0_31, %c0_32] : memref<1x4x32x128xf32, #tpu.memory_space<vmem>>, vector<1x1x32x128xf32>
    %41 = vector.shape_cast %40 : vector<1x1x32x128xf32> to vector<32x128xf32>
    %c3_i32 = arith.constant 3 : i32
    %42 = vector.broadcast %c3_i32 : i32 to vector<32x128xi32>
    %43 = arith.cmpi eq, %2, %42 : vector<32x128xi32>
    %44 = arith.subf %41, %13 : vector<32x128xf32>
    %45 = math.exp %44 : vector<32x128xf32>
    %46 = arith.addf %38, %45 : vector<32x128xf32>
    %47 = arith.select %43, %41, %39 : vector<32x128xi1>, vector<32x128xf32>
    %48 = arith.subf %47, %13 : vector<32x128xf32>
    %49 = math.log %46 : vector<32x128xf32>
    %50 = arith.subf %48, %49 : vector<32x128xf32>
    %51 = math.exp %50 : vector<32x128xf32>
    %cst_33 = arith.constant 1.000000e+00 : f32
    %52 = vector.broadcast %cst_33 : f32 to vector<32x128xf32>
    %53 = arith.subf %52, %51 : vector<32x128xf32>
    %cst_34 = arith.constant 1.000000e+00 : f32
    %54 = vector.broadcast %cst_34 : f32 to vector<32x128xf32>
    %55 = arith.mulf %54, %53 : vector<32x128xf32>
    %56 = arith.mulf %55, %53 : vector<32x128xf32>
    %57 = arith.mulf %56, %50 : vector<32x128xf32>
    %cst_35 = arith.constant 0.000000e+00 : f32
    %58 = vector.broadcast %cst_35 : f32 to vector<32x128xf32>
    %59 = arith.subf %58, %57 : vector<32x128xf32>
    %c0_i32_36 = arith.constant 0 : i32
    %60 = vector.broadcast %c0_i32_36 : i32 to vector<32x128xi32>
    %61 = arith.cmpi sge, %2, %60 : vector<32x128xi32>
    %cst_37 = arith.constant 0.000000e+00 : f32
    %62 = vector.broadcast %cst_37 : f32 to vector<32x128xf32>
    %63 = arith.select %61, %59, %62 : vector<32x128xi1>, vector<32x128xf32>
    %cst_38 = arith.constant 0.000000e+00 : f32
    %64 = vector.broadcast %cst_38 : f32 to vector<8x128xf32>
    %65 = vector.extract_strided_slice %63 {offsets = [0, 0], sizes = [8, 128], strides = [1, 1]} : vector<32x128xf32> to vector<8x128xf32>
    %66 = arith.addf %64, %65 : vector<8x128xf32>
    %67 = vector.extract_strided_slice %63 {offsets = [8, 0], sizes = [8, 128], strides = [1, 1]} : vector<32x128xf32> to vector<8x128xf32>
    %68 = arith.addf %66, %67 : vector<8x128xf32>
    %69 = vector.extract_strided_slice %63 {offsets = [16, 0], sizes = [8, 128], strides = [1, 1]} : vector<32x128xf32> to vector<8x128xf32>
    %70 = arith.addf %68, %69 : vector<8x128xf32>
    %71 = vector.extract_strided_slice %63 {offsets = [24, 0], sizes = [8, 128], strides = [1, 1]} : vector<32x128xf32> to vector<8x128xf32>
    %72 = arith.addf %70, %71 : vector<8x128xf32>
    %73 = arith.addf %0, %72 : vector<8x128xf32>
    %c0_39 = arith.constant 0 : index
    %c0_40 = arith.constant 0 : index
    %c0_41 = arith.constant 0 : index
    %c0_42 = arith.constant 0 : index
    %74 = vector.load %arg4[%c0_39, %c0_40, %c0_41, %c0_42] : memref<1x1x8x128xf32, #tpu.memory_space<vmem>>, vector<1x1x8x128xf32>
    %75 = vector.shape_cast %74 : vector<1x1x8x128xf32> to vector<8x128xf32>
    %76 = vector.shape_cast %73 : vector<8x128xf32> to vector<1x1x8x128xf32>
    tpu.vector_store %arg4[%c0_39, %c0_40, %c0_41, %c0_42], %76 {strides = array<i32>} : memref<1x1x8x128xf32, #tpu.memory_space<vmem>>, vector<1x1x8x128xf32>,
    return
  }
  func.func @transform_0(%arg0: i32, %arg1: i32) -> (i32, i32, i32, i32) {
    %c0_i32 = arith.constant 0 : i32
    %c0_i32_0 = arith.constant 0 : i32
    %c0_i32_1 = arith.constant 0 : i32
    return %arg0, %c0_i32, %arg1, %c0_i32_0 : i32, i32, i32, i32
  }
  func.func @transform_1(%arg0: i32, %arg1: i32) -> (i32, i32, i32) {
    %c0_i32 = arith.constant 0 : i32
    %c0_i32_0 = arith.constant 0 : i32
    return %arg0, %arg1, %c0_i32 : i32, i32, i32
  }
  func.func @transform_2(%arg0: i32, %arg1: i32) -> (i32, i32, i32, i32) {
    %c0_i32 = arith.constant 0 : i32
    %c0_i32_0 = arith.constant 0 : i32
    %c0_i32_1 = arith.constant 0 : i32
    return %arg0, %arg1, %c0_i32, %c0_i32_0 : i32, i32, i32, i32
  }
}

</mosaic_0001>

<bundles_post_ra>
// kernel: tpu_custom_call.1
= control target key start
LH: loop header
LB: loop body
LE: loop exit
PB: predicated region body
PF: predicated region fallthrough
CT: control target
= control target key end

     0   :  { %7 = vsyncpa [#allocation3], 0  ;;  %s1168_s0 = inlined_call_operand.hbm [shape: f32[2,4,32,128], index: 0, kind: input, shape index: {}]   ;;  %s1169_s1 = inlined_call_operand.hbm [shape: s32[2,32,128], index: 1, kind: input, shape index: {}]   ;;  %s1170_s2 = inlined_call_operand.hbm [shape: f32[2,1,8,128], index: 2, kind: output, shape index: {}]  }
   0x1   :  { %9 = vsyncpa [#allocation3 + $0x1], 0 }
   0x2   :  { %10 = vsyncpa [#allocation6], 0 }
   0x3   :  { %12 = vsyncpa [#allocation6 + $0x1], 0 }
   0x4   :  { %13 = vsyncpa [#allocation4], 0 }
   0x5   :  { %15 = vsyncpa [#allocation4 + $0x1], 0  ;;  %s845_s9 = smov 0   ;;  %s847_s10 = smov 0  }
   0x6   :  { %s849_s11 = smov 0   ;;  %s851_s12 = smov 0  }
   0x7   :  { %s853_s13 = smov 0   ;;  %s855_s14 = smov 0  }
   0x8 LB: > { %s534_s15 = sadd.s32 4294967295, %s823_s14   ;;  %s535_s16 = sadd.s32 4294967294, %s823_s14   ;;  %s823_s14 = sphi %s855_s14, %s21_s14   ;;  %s819_s13 = sphi %s853_s13, %s1182_s13   ;;  %s815_s12 = sphi %s851_s12, %s1181_s12   ;;  %s811_s11 = sphi %s849_s11, %s1180_s11   ;;  %s807_s10 = sphi %s847_s10, %s1179_s10   ;;  %s803_s9 = sphi %s845_s9, %s1178_s9  }
   0x9   : > { %s33_s17 = sadd.s32 1, %s819_s13  ;;  %s42_s18 = sadd.s32 1, %s811_s11 }
   0xa   : > { %p35_p0 = scmp.ge.s32.totalorder %s33_s17, 2  ;;  %p49_p1 = scmp.ne.s32.totalorder %s811_s11, %s807_s10 }
   0xb   : > { %p50_p2 = scmp.eq.s32.totalorder %s823_s14, 0  ;;  %p55_p3 = scmp.ne.s32.totalorder %s807_s10, %s803_s9 }
   0xc   : > { %s1184_s17 = smov (%p35_p0, %s33_s17), 0  ;;  %p56_p5 = scmp.eq.s32.totalorder %s534_s15, 0 }
   0xd   : > { %p886_p4 = por %p50_p2, %p49_p1  ;;  %s37_s20 = ssub.s32 %s819_s13, %s1184_s17 }
   0xe   : > { %p109_p6 = scmp.eq.s32.totalorder %s534_s15, 1  ;;  %p40_p7 = scmp.eq.s32.totalorder %s37_s20, 0 }
   0xf   : > { %p892_p8 = por %p56_p5, %p55_p3  ;;  %p115_p10 = scmp.eq.s32.totalorder %s535_s16, 1 }
  0x10   : > { %p896_p9 = por %p109_p6, %p49_p1  ;;  %p583_p13 = scmp.lt.s32.totalorder %s823_s14, 2 }
  0x11   : > { %s901_s23 = scalar_select %p40_p7, %s811_s11, %s42_s18  }
  0x12   : > { %p903_p11 = por %p115_p10, %p55_p3  ;;  %s910_s25 = sand.u32 1, %s811_s11  }
  0x13   : > { %s538_s26 = sshll.u32 %s910_s25, 7  ;;  %s564_s27 = sshll.u32 %s819_s13, 11 }
  0x14   : > { %s147_s30 = scalar_lea.hbm %s1168_s0, %s564_s27  ;;  %s139_s3 = scalar_lea.vmem [#allocation2], %s538_s26 }
  0x15   : > { %s148_s4 = sshll.u32 %s139_s3, 4  ;;  %p919_p0 = pnand %p583_p13, %p886_p4  ;;  %s149_s4 = int_to_ptr.vmem [resolvable:$true] %s148_s4 }
  0x16   : > { %p544_p1 = scmp.ge.s32.totalorder %s823_s14, 1  ;;  %s136_s6 = scalar_lea.sflag [#allocation3], %s910_s25 }
  0x17   : > { %p685_p2 = pneg %p919_p0  ;;  %s696_s7 = scalar_lea.vmem %s149_s4, 2048 }
  0x18   : > { %p697_p3 = scmp.ne.s32.totalorder %s149_s4, %s696_s7  ;;  %s825_s8 = smov [#allocation2]  }
  0x19   : > { %s701_s15 = sshll.u32 %s825_s8, 4  ;;  %s702_s15 = int_to_ptr.vmem [resolvable:$false] %s701_s15 }
  0x1a   : > { %p699_p5 = pnand %p697_p3, %p685_p2  ;;  %s703_s16 = scalar_lea.vmem %s702_s15, 4096 }
  0x1b   : > { %p704_p4 = scmp.lt.s32.totalorder %s149_s4, %s702_s15  ;;  %p705_p7 = scmp.lt.s32.totalorder %s703_s16, %s696_s7 }
  0x1c   : > { %p700_p6 = pneg %p699_p5 }
  0x1d   : > { %p706_p10 = por %p705_p7, %p704_p4 }
  0x1f   : > { %p707_p13 = pnand %p706_p10, %p700_p6 }
  0x21   : > { %710 = shalt.err (!%p707_p13)
}
  0x22   : > { %s826_s18 = smov 128   ;;  %s827_s19 = smov 8  }
  0x23   : > { %575 = dma.hbm_to_vmem [thread:$0]  (!%p919_p0), %s147_s30, 2048, %s149_s4, %s136_s6, %s826_s18, %s826_s18, %s827_s19  }
  0x24   : > { %p179_p3 = scmp.lt.s32.totalorder %s823_s14, 3  ;;  %s541_s20 = sshll.u32 %s910_s25, 5 }
  0x25   : > { %s565_s26 = sshll.u32 %s819_s13, 9  ;;  %s162_s7 = scalar_lea.vmem [#allocation5], %s541_s20 }
  0x26   : > { %p937_p5 = pnand %p544_p1, %p179_p3  ;;  %s170_s3 = scalar_lea.hbm %s1169_s1, %s565_s26 }
  0x27   : > { %s171_s8 = sshll.u32 %s162_s7, 4  ;;  %s159_s15 = scalar_lea.sflag [#allocation6], %s910_s25  ;;  %s172_s8 = int_to_ptr.vmem [resolvable:$true] %s171_s8 }
  0x28   : > { %s724_s16 = scalar_lea.vmem %s172_s8, 512  ;;  %s828_s30 = smov [#allocation5]  }
  0x29   : > { %p725_p6 = scmp.ne.s32.totalorder %s172_s8, %s724_s16  ;;  %s729_s4 = sshll.u32 %s828_s30, 4  ;;  %s730_s4 = int_to_ptr.vmem [resolvable:$false] %s729_s4 }
  0x2a   : > { %s731_s6 = scalar_lea.vmem %s730_s4, 1024  ;;  %p732_p1 = scmp.lt.s32.totalorder %s172_s8, %s730_s4 }
  0x2b   : > { %p727_p4 = pnand %p725_p6, %p685_p2  ;;  %p733_p10 = scmp.lt.s32.totalorder %s731_s6, %s724_s16 }
  0x2d   : > { %p728_p7 = pneg %p727_p4  ;;  %p734_p13 = por %p733_p10, %p732_p1 }
  0x2f   : > { %p735_p3 = pnand %p734_p13, %p728_p7 }
  0x31   : > { %738 = shalt.err (!%p735_p3)
}
  0x32   : > { %578 = dma.hbm_to_vmem [thread:$0]  (!%p919_p0), %s170_s3, 512, %s172_s8, %s159_s15, %s826_s18, %s826_s18, %s827_s19  }
  0x33   : > { %183 = sbr.rel (%p937_p5) target bundleno = 163 (0xa3), region = 28  ;;  %s953_s25 = sand.u32 (!%p937_p5), 1, %s807_s10  }
  0x34   : > { %s545_s20 = sshll.u32 (!%p937_p5), %s953_s25, 7  ;;  %s186_s26 = scalar_lea.sflag (!%p937_p5), [#allocation3], %s953_s25 }
  0x35   : > { %s957_s28 = scalar_lea.vmem (!%p937_p5), [#allocation2], %s545_s20 }
  0x38   : > { %790 = dma.done.wait (%p892_p8), %s186_s26, 2048  }
  0x39   : > { %792 = vsyncadd (%p892_p8), %s186_s26, 4294965248  ;;  %s546_s5 = sshll.u32 %s953_s25, 5  ;;  %s195_s18 = scalar_lea.sflag [#allocation6], %s953_s25 }
  0x3a   : > { %s965_s19 = scalar_lea.vmem [#allocation5], %s546_s5 }
  0x3b   : > { %794 = dma.done.wait (%p892_p8), %s195_s18, 512  }
  0x3c   : > { %796 = vsyncadd (%p892_p8), %s195_s18, 4294966784  ;;  %v972_v0 = vld [vmem:[%s957_s28] sm:$0xff]  ;;  %v975_v1 = vld [vmem:[%s957_s28 + $0x8] sm:$0xff]  ;;  %s547_s21 = sshll.u32 %s953_s25, 3  ;;  %s561_s3 = sshll.u32 %s815_s12, 7 }
  0x3d   : > { %v978_v2 = vld [vmem:[%s957_s28 + $0x10] sm:$0xff]  ;;  %v981_v3 = vld [vmem:[%s957_s28 + $0x18] sm:$0xff]  ;;  %v984_v4 = vld [vmem:[%s957_s28 + $0x20] sm:$0xff]  ;;  %s223_s27 = scalar_lea.vmem [#allocation7], %s547_s21  ;;  %s424_s15 = scalar_lea.hbm %s1170_s2, %s561_s3 }
  0x3e   : > { %v987_v5 = vld [vmem:[%s957_s28 + $0x28] sm:$0xff]  ;;  %v990_v6 = vld [vmem:[%s957_s28 + $0x30] sm:$0xff]  ;;  %v993_v7 = vld [vmem:[%s957_s28 + $0x38] sm:$0xff]  ;;  %v239_v8 = vmax.f32 %v972_v0, %v984_v4  ;;  %s426_s29 = sshll.u32 %s223_s27, 4  ;;  %s412_s16 = scalar_lea.sflag [#allocation4], %s953_s25  ;;  %s427_s29 = int_to_ptr.vmem [resolvable:$true] %s426_s29 }
  0x3f   : > { %v240_v9 = vmax.f32 %v975_v1, %v987_v5  ;;  %v241_v10 = vmax.f32 %v978_v2, %v990_v6  ;;  %v242_v11 = vmax.f32 %v981_v3, %v993_v7  ;;  %v1004_v12 = vld [vmem:[%s957_s28 + $0x40] sm:$0xff]  ;;  %v1007_v13 = vld [vmem:[%s957_s28 + $0x48] sm:$0xff]  ;;  %v1010_v14 = vld [vmem:[%s957_s28 + $0x50] sm:$0xff]  ;;  %s739_s30 = scalar_lea.vmem %s427_s29, 128  ;;  %s829_s4 = smov [#allocation7]  }
  0x40   : > { %v1013_v15 = vld [vmem:[%s957_s28 + $0x58] sm:$0xff]  ;;  %v248_v16 = vmax.f32 %v239_v8, %v1004_v12  ;;  %v1017_v17 = vld [vmem:[%s957_s28 + $0x60] sm:$0xff]  ;;  %v1020_v18 = vld [vmem:[%s957_s28 + $0x68] sm:$0xff]  ;;  %p740_p8 = scmp.ne.s32.totalorder %s427_s29, %s739_s30  ;;  %s743_s6 = sshll.u32 %s829_s4, 4  ;;  %s744_s6 = int_to_ptr.vmem [resolvable:$false] %s743_s6 }
  0x41   : > { %v249_v19 = vmax.f32 %v240_v9, %v1007_v13  ;;  %v250_v20 = vmax.f32 %v241_v10, %v1010_v14  ;;  %v251_v21 = vmax.f32 %v242_v11, %v1013_v15  ;;  %v1026_v22 = vld [vmem:[%s957_s28 + $0x70] sm:$0xff]  ;;  %v1029_v23 = vld [vmem:[%s957_s28 + $0x78] sm:$0xff]  ;;  %s745_s20 = scalar_lea.vmem %s744_s6, 256  ;;  %p746_p5 = scmp.lt.s32.totalorder %s427_s29, %s744_s6 }
  0x42   : > { %v1032_v24 = vmax.f32 %v248_v16, %v1017_v17  ;;  %p741_p0 = pnand %p740_p8, %p896_p9  ;;  %p747_p6 = scmp.lt.s32.totalorder %s745_s20, %s739_s30 }
  0x43   : > { %v1035_v25 = vmax.f32 %v249_v19, %v1020_v18  ;;  %v1038_v26 = vmax.f32 %v250_v20, %v1026_v22  ;;  %v1041_v27 = vmax.f32 %v251_v21, %v1029_v23 }
  0x44   : > { %v265_v28 = vsub.f32 %v972_v0, %v1032_v24  ;;  %v289_v29 = vsub.f32 %v984_v4, %v1032_v24  ;;  %v313_v41 = vsub.f32 %v1004_v12, %v1032_v24  ;;  %v337_v51 = vsub.f32 %v1017_v17, %v1032_v24  ;;  %p742_p2 = pneg %p741_p0  ;;  %p748_p4 = por %p747_p6, %p746_p5 }
  0x45   : > { %v266_v30 = vsub.f32 %v975_v1, %v1035_v25  ;;  %v267_v31 = vsub.f32 %v978_v2, %v1038_v26  ;;  %v268_v32 = vsub.f32 %v981_v3, %v1041_v27  ;;  %v290_v33 = vsub.f32 %v987_v5, %v1035_v25 }
  0x46   : > { %v269_v34 = vmul.f32 1.442695, %v265_v28  ;;  %v291_v35 = vsub.f32 %v990_v6, %v1038_v26  ;;  %v292_v39 = vsub.f32 %v993_v7, %v1041_v27  ;;  %v293_v40 = vmul.f32 1.442695, %v289_v29  ;;  %p749_p7 = pnand %p748_p4, %p742_p2 }
  0x47   : > { %v271_v36 = vmul.f32 1.442695, %v266_v30  ;;  %v273_v37 = vmul.f32 1.442695, %v267_v31  ;;  %v275_v38 = vmul.f32 1.442695, %v268_v32  ;;  %v314_v43 = vsub.f32 %v1007_v13, %v1035_v25 }
  0x48   : > { %635 = vpow2.f32 %v269_v34  ;;  %v295_v42 = vmul.f32 1.442695, %v290_v33  ;;  %v315_v44 = vsub.f32 %v1010_v14, %v1038_v26  ;;  %v297_v45 = vmul.f32 1.442695, %v291_v35  ;;  %v1076_v30 = vld [vmem:[%s965_s19] sm:$0xff]  ;;  %v1079_v33 = vld [vmem:[%s965_s19 + $0x8] sm:$0xff] }
  0x49   : > { %637 = vpow2.f32 %v271_v36  ;;  %v299_v46 = vmul.f32 1.442695, %v292_v39  ;;  %v316_v47 = vsub.f32 %v1013_v15, %v1041_v27  ;;  %v317_v48 = vmul.f32 1.442695, %v313_v41  ;;  %v1082_v36 = vld [vmem:[%s965_s19 + $0x10] sm:$0xff] }
  0x4a   : > { %639 = vpow2.f32 %v273_v37  ;;  %v319_v49 = vmul.f32 1.442695, %v314_v43  ;;  %v321_v50 = vmul.f32 1.442695, %v315_v44  ;;  %v338_v52 = vsub.f32 %v1020_v18, %v1035_v25  ;;  %v1085_v37 = vld [vmem:[%s965_s19 + $0x18] sm:$0xff] }
  0x4b   : > { %641 = vpow2.f32 %v275_v38  ;;  %v339_v53 = vsub.f32 %v1026_v22, %v1038_v26  ;;  %v323_v54 = vmul.f32 1.442695, %v316_v47  ;;  %v340_v55 = vsub.f32 %v1029_v23, %v1041_v27 }
  0x4c   : > { %643 = vpow2.f32 %v293_v40  ;;  %v341_v56 = vmul.f32 1.442695, %v337_v51  ;;  %v343_v57 = vmul.f32 1.442695, %v338_v52  ;;  %vm261_vm0 = vcmp.eq.s32.totalorder %v1076_v30, 0 }
  0x4d   : > { %645 = vpow2.f32 %v295_v42  ;;  %v345_v58 = vmul.f32 1.442695, %v339_v53  ;;  %v347_v59 = vmul.f32 1.442695, %v340_v55  ;;  %vm262_vm1 = vcmp.eq.s32.totalorder %v1079_v33, 0 }
  0x4e   : > { %647 = vpow2.f32 %v297_v45  ;;  %vm263_vm2 = vcmp.eq.s32.totalorder %v1082_v36, 0  ;;  %vm264_vm3 = vcmp.eq.s32.totalorder %v1085_v37, 0  ;;  %vm285_vm4 = vcmp.eq.s32.totalorder %v1076_v30, 1 }
  0x4f   : > { %649 = vpow2.f32 %v299_v46  ;;  %v281_v46 = vsel %vm261_vm0, %v972_v0, 0.0  ;;  %vm286_vm5 = vcmp.eq.s32.totalorder %v1079_v33, 1  ;;  %v284_v51 = vsel %vm264_vm3, %v981_v3, 0.0 }
  0x50   : > { %651 = vpow2.f32 %v317_v48  ;;  %v282_v48 = vsel %vm262_vm1, %v975_v1, 0.0  ;;  %vm287_vm6 = vcmp.eq.s32.totalorder %v1082_v36, 1  ;;  %vm288_vm7 = vcmp.eq.s32.totalorder %v1085_v37, 1 }
  0x51   : > { %653 = vpow2.f32 %v319_v49  ;;  %v305_v0 = vsel %vm285_vm4, %v984_v4, %v281_v46  ;;  %vm309_vm8 = vcmp.eq.s32.totalorder %v1076_v30, 2  ;;  %v306_v1 = vsel %vm286_vm5, %v987_v5, %v282_v48 }
  0x52   : > { %655 = vpow2.f32 %v321_v50  ;;  %v283_v50 = vsel %vm263_vm2, %v978_v2, 0.0  ;;  %vm310_vm9 = vcmp.eq.s32.totalorder %v1079_v33, 2  ;;  %vm311_vm10 = vcmp.eq.s32.totalorder %v1082_v36, 2 }
  0x53   : > { %657 = vpow2.f32 %v323_v54  ;;  %v307_v52 = vsel %vm287_vm6, %v990_v6, %v283_v50  ;;  %v308_v2 = vsel %vm288_vm7, %v993_v7, %v284_v51  ;;  %vm312_vm11 = vcmp.eq.s32.totalorder %v1085_v37, 2 }
  0x54   : > { %659 = vpow2.f32 %v341_v56  ;;  %v329_v3 = vsel %vm309_vm8, %v1004_v12, %v305_v0  ;;  %vm333_vm12 = vcmp.eq.s32.totalorder %v1076_v30, 3  ;;  %v330_v4 = vsel %vm310_vm9, %v1007_v13, %v306_v1 }
  0x55   : > { %v636_v60 = vpop.eup %635  ;;  %661 = vpow2.f32 %v343_v57  ;;  %vm334_vm13 = vcmp.eq.s32.totalorder %v1079_v33, 3  ;;  %v331_v5 = vsel %vm311_vm10, %v1010_v14, %v307_v52  ;;  %vm335_vm14 = vcmp.eq.s32.totalorder %v1082_v36, 3 }
  0x56   : > { %v638_v61 = vpop.eup %637  ;;  %663 = vpow2.f32 %v345_v58  ;;  %v332_v6 = vsel %vm312_vm11, %v1013_v15, %v308_v2  ;;  %vm336_vm15 = vcmp.eq.s32.totalorder %v1085_v37, 3  ;;  %v353_v7 = vsel %vm333_vm12, %v1017_v17, %v329_v3 }
  0x57   : > { %v640_v62 = vpop.eup %639  ;;  %665 = vpow2.f32 %v347_v59  ;;  %v354_v53 = vsel %vm334_vm13, %v1020_v18, %v330_v4  ;;  %v355_v12 = vsel %vm335_vm14, %v1026_v22, %v331_v5  ;;  %v356_v54 = vsel %vm336_vm15, %v1029_v23, %v332_v6 }
  0x58   : > { %v642_v63 = vpop.eup %641  ;;  %v357_v13 = vsub.f32 %v353_v7, %v1032_v24  ;;  %v358_v56 = vsub.f32 %v354_v53, %v1035_v25  ;;  %v359_v57 = vsub.f32 %v355_v12, %v1038_v26  ;;  %v360_v59 = vsub.f32 %v356_v54, %v1041_v27 }
  0x59   : > { %v644_v8 = vpop.eup %643  ;;  %vm397_vm0 = vcmp.ge.s32.totalorder %v1076_v30, 0  ;;  %vm398_vm1 = vcmp.ge.s32.totalorder %v1079_v33, 0  ;;  %vm399_vm2 = vcmp.ge.s32.totalorder %v1082_v36, 0  ;;  %vm400_vm3 = vcmp.ge.s32.totalorder %v1085_v37, 0 }
  0x5a   : > { %v646_v9 = vpop.eup %645  ;;  %v301_v10 = vadd.f32 %v644_v8, %v636_v60 }
  0x5b   : > { %v648_v11 = vpop.eup %647  ;;  %v302_v16 = vadd.f32 %v646_v9, %v638_v61 }
  0x5c   : > { %v650_v19 = vpop.eup %649  ;;  %v303_v20 = vadd.f32 %v648_v11, %v640_v62 }
  0x5d   : > { %v652_v21 = vpop.eup %651  ;;  %v304_v28 = vadd.f32 %v650_v19, %v642_v63 }
  0x5e   : > { %v654_v29 = vpop.eup %653  ;;  %v325_v31 = vadd.f32 %v652_v21, %v301_v10 }
  0x5f   : > { %v656_v32 = vpop.eup %655  ;;  %v326_v34 = vadd.f32 %v654_v29, %v302_v16 }
  0x60   : > { %v658_v35 = vpop.eup %657  ;;  %v327_v38 = vadd.f32 %v656_v32, %v303_v20 }
  0x61   : > { %v660_v39 = vpop.eup %659  ;;  %v328_v40 = vadd.f32 %v658_v35, %v304_v28 }
  0x62   : > { %v662_v41 = vpop.eup %661  ;;  %v349_v42 = vadd.f32 %v660_v39, %v325_v31 }
  0x63   : > { %v664_v43 = vpop.eup %663  ;;  %v350_v44 = vadd.f32 %v662_v41, %v326_v34 }
  0x64   : > { %v666_v45 = vpop.eup %665  ;;  %v351_v47 = vadd.f32 %v664_v43, %v327_v38  ;;  %667 = vlog2.f32 %v349_v42 }
  0x65   : > { %v352_v49 = vadd.f32 %v666_v45, %v328_v40  ;;  %669 = vlog2.f32 %v350_v44 }
  0x66   : > { %671 = vlog2.f32 %v351_v47 }
  0x67   : > { %673 = vlog2.f32 %v352_v49 }
  0x71   : > { %v668_v55 = vpop.eup %667 }
  0x72   : > { %v670_v14 = vpop.eup %669  ;;  %v362_v58 = vmul.f32 0.6931472, %v668_v55 }
  0x73   : > { %v672_v15 = vpop.eup %671  ;;  %v364_v60 = vmul.f32 0.6931472, %v670_v14 }
  0x74   : > { %v674_v17 = vpop.eup %673  ;;  %v366_v61 = vmul.f32 0.6931472, %v672_v15  ;;  %v369_v18 = vsub.f32 %v357_v13, %v362_v58 }
  0x75   : > { %v368_v62 = vmul.f32 0.6931472, %v674_v17  ;;  %v370_v22 = vsub.f32 %v358_v56, %v364_v60 }
  0x76   : > { %v371_v63 = vsub.f32 %v359_v57, %v366_v61  ;;  %v373_v23 = vmul.f32 1.442695, %v369_v18 }
  0x77   : > { %v372_v8 = vsub.f32 %v360_v59, %v368_v62  ;;  %v375_v24 = vmul.f32 1.442695, %v370_v22 }
  0x78   : > { %675 = vpow2.f32 %v373_v23  ;;  %v377_v9 = vmul.f32 1.442695, %v371_v63 }
  0x79   : > { %677 = vpow2.f32 %v375_v24  ;;  %v379_v25 = vmul.f32 1.442695, %v372_v8 }
  0x7a   : > { %679 = vpow2.f32 %v377_v9 }
  0x7b   : > { %681 = vpow2.f32 %v379_v25 }
  0x85   : > { %v676_v26 = vpop.eup %675 }
  0x86   : > { %v678_v10 = vpop.eup %677  ;;  %v381_v27 = vsub.f32 1.0, %v676_v26 }
  0x87   : > { %v680_v11 = vpop.eup %679  ;;  %v382_v16 = vsub.f32 1.0, %v678_v10 }
  0x88   : > { %v682_v19 = vpop.eup %681  ;;  %v383_v20 = vsub.f32 1.0, %v680_v11  ;;  %v385_v21 = vmul.f32 %v381_v27, %v381_v27 }
  0x89   : > { %v384_v28 = vsub.f32 1.0, %v682_v19  ;;  %v386_v29 = vmul.f32 %v382_v16, %v382_v16 }
  0x8a   : > { %v387_v31 = vmul.f32 %v383_v20, %v383_v20  ;;  %v389_v32 = vmul.f32 %v385_v21, %v369_v18 }
  0x8b   : > { %v388_v34 = vmul.f32 %v384_v28, %v384_v28  ;;  %v390_v35 = vmul.f32 %v386_v29, %v370_v22 }
  0x8c   : > { %v391_v38 = vmul.f32 %v387_v31, %v371_v63  ;;  %v393_v39 = vsub.f32 0.0, %v389_v32 }
  0x8d   : > { %v392_v40 = vmul.f32 %v388_v34, %v372_v8  ;;  %v394_v41 = vsub.f32 0.0, %v390_v35 }
  0x8e   : > { %v395_v42 = vsub.f32 0.0, %v391_v38  ;;  %v401_v43 = vsel %vm397_vm0, %v393_v39, 0.0 }
  0x8f   : > { %v396_v44 = vsub.f32 0.0, %v392_v40  ;;  %v402_v45 = vsel %vm398_vm1, %v394_v41, 0.0 }
  0x90   : > { %v403_v46 = vsel %vm399_vm2, %v395_v42, 0.0  ;;  %v406_v47 = vadd.f32 %v402_v45, %v401_v43 }
  0x91   : > { %v404_v30 = vsel %vm400_vm3, %v396_v44, 0.0 }
  0x92   : > { %v407_v48 = vadd.f32 %v406_v47, %v403_v46 }
  0x94   : > { %v408_v33 = vadd.f32 %v407_v48, %v404_v30 }
  0x96   : > { %410 = vst [vmem:[%s223_s27] sm:$0xff] %v408_v33 }
  0x97   : > { %752 = shalt.err (!%p749_p7)
}
  0x98   : > { %s753_s12 = scalar_lea.hbm %s424_s15, 128  ;;  %s757_s28 = scalar_lea.hbm %s1170_s2, 256 }
  0x99   : > { %p754_p1 = scmp.ne.s32.totalorder %s424_s15, %s753_s12  ;;  %p758_p3 = scmp.lt.s32.totalorder %s424_s15, %s1170_s2 }
  0x9a   : > { %p759_p8 = scmp.lt.s32.totalorder %s757_s28, %s753_s12 }
  0x9b   : > { %p755_p10 = pnand %p754_p1, %p896_p9 }
  0x9c   : > { %p760_p0 = por %p759_p8, %p758_p3 }
  0x9d   : > { %p756_p13 = pneg %p755_p10 }
  0x9f   : > { %p761_p12 = pnand %p760_p0, %p756_p13 }
  0xa1   : > { %764 = shalt.err (!%p761_p12)
}
  0xa2   : > { %570 = dma.vmem_to_hbm [thread:$0]  (%p896_p9), %s427_s29, 128, %s424_s15, %s412_s16  }
  0xa3 PF: > { %s438_s19 = sand.u32 1, %s803_s9   ;;  %p1177_p2 = scmp.ge.s32.totalorder %s823_s14, 2 }
  0xa4   : > { %s439_s21 = scalar_lea.sflag [#allocation4], %s438_s19 }
  0xa5   : > { %p580_p5 = pnand %p1177_p2, %p903_p11 }
  0xa7   : > { %p581_p6 = pneg %p580_p5 }
  0xa9   : > { %798 = dma.done.wait (%p581_p6), %s439_s21, 128  }
  0xaa   : > { %800 = vsyncadd (%p581_p6), %s439_s21, 4294967168  ;;  %s21_s14 = sadd.s32 1, %s823_s14   ;;  %s1178_s9 = smov %s807_s10 }
  0xab   : > { %p18_p4 = scmp.ge.s32.totalorder %s21_s14, 4   ;;  %s1179_s10 = smov %s811_s11 }
  0xac   : > { %s1180_s11 = smov %s901_s23  ;;  %s1181_s12 = smov %s819_s13 }
  0xad   : > { %s1182_s13 = smov %s1184_s17  ;;  %20 = sbr.rel (!%p18_p4) target bundleno = 8 (0x8), region = 89 }
  0xb2   :  { %444 = vsyncpa [#allocation3], 1 }
  0xb3   :  { %446 = vsyncpa [#allocation3 + $0x1], 1 }
  0xb4   :  { %447 = vsyncpa [#allocation6], 1 }
  0xb5   :  { %449 = vsyncpa [#allocation6 + $0x1], 1 }
  0xb6   :  { %450 = vsyncpa [#allocation4], 1 }
  0xb7   :  { %452 = vsyncpa [#allocation4 + $0x1], 1 }

</bundles_post_ra>
